<compile_context>
chip_gen: v5e
topology: v5e:2x2
jax: 0.10.0
libtpu: 0.0.40
codegen_flags: <defaults>
</compile_context>

<pallas_src>
import functools

import numpy as np
import jax
import jax.numpy as jnp
from jax.experimental import pallas as pl
from jax.experimental.pallas import tpu as pltpu


def _minmax_kernel(x_ref, o_ref, *, min_val, range_val):
    # Fused cast (input may be bf16/f16/int8/f32) + normalize.
    xf = x_ref[...].astype(jnp.float32)
    o_ref[...] = (xf - min_val) / range_val


def _round_up(v: int, m: int) -> int:
    return ((v + m - 1) // m) * m


def minmax_normalize(x, min_val: float, max_val: float, dimension: int = 1):
    """Pallas implementation of MinMaxNormalizeLayer.forward."""
    total = int(x.size)
    rows_out = total // dimension

    # ---- Lane-dense 2-D layout (elementwise op => any row-major reshape ok).
    lane = None
    for cand in (512, 256, 128):
        if total % cand == 0:
            lane = cand
            break

    x_flat = x.reshape(-1)            # original dtype; cast happens in-kernel
    pad = 0
    if lane is None:
        # Pad flat buffer up to a multiple of 128 lanes; slice off afterwards.
        lane = 128
        pad = _round_up(total, lane) - total
        x_flat = jnp.pad(x_flat, (0, pad))

    rows = x_flat.size // lane
    x2 = x_flat.reshape(rows, lane)

    # ---- Block sizing: ~8 MiB of f32 output per block.
    # Double-buffered input (<=4 B/elem) + output => <= ~32 MiB, under the
    # 48 MiB scoped-VMEM limit we request (v7x physical VMEM is 64 MiB).
    TARGET_BLOCK_BYTES = 8 * 1024 * 1024
    if rows <= 8:
        block_rows = rows                      # full-dim block (allowed)
    else:
        target_rows = max(8, ((TARGET_BLOCK_BYTES // (4 * lane)) // 8) * 8)
        # Keep >=2 grid steps so both v7x TensorCores stream (no-op v5e/v6e).
        half_rows = max(8, _round_up((rows + 1) // 2, 8))
        block_rows = min(target_rows, half_rows)

    grid = (pl.cdiv(rows, block_rows),)

    # Compile-time scalar constants (the module's frozen parameters).
    min_c = np.float32(min_val)
    range_c = np.float32(max_val) - np.float32(min_val)   # divide in-kernel

    kernel = functools.partial(_minmax_kernel, min_val=min_c, range_val=range_c)

    in_bytes = total * x.dtype.itemsize
    out_bytes = total * 4

    out = pl.pallas_call(
        kernel,
        out_shape=jax.ShapeDtypeStruct((rows, lane), jnp.float32),
        grid_spec=pl.GridSpec(
            grid=grid,
            in_specs=[pl.BlockSpec((block_rows, lane), lambda i: (i, 0))],
            out_specs=pl.BlockSpec((block_rows, lane), lambda i: (i, 0)),
        ),
        compiler_params=pltpu.CompilerParams(
            dimension_semantics=("parallel",),
            vmem_limit_bytes=48 * 1024 * 1024,
        ),
        cost_estimate=pl.CostEstimate(
            flops=2 * total,
            transcendentals=0,
            bytes_accessed=in_bytes + out_bytes,
        ),
    )(x2)

    # Restore the module's output view: (-1, dimension), dropping any padding.
    out_flat = out.reshape(-1)
    if pad:
        out_flat = out_flat[:total]
    return out_flat.reshape(rows_out, dimension)


if __name__ == "__main__":
    key = jax.random.PRNGKey(0)
    # Small NCHW input consistent with a typical preprocess pipeline.
    x = jax.random.normal(key, (2, 4, 16, 16), dtype=jnp.float32) * 3.0 + 2.0

    min_val, max_val = -1.0, 5.0
    dimension = 16  # module's `dimension` arg (output_dim)

    y = minmax_normalize(x, min_val, max_val, dimension=dimension)
    y = jax.block_until_ready(y)

    # Reference (pure JAX, mirrors the PyTorch forward).
    ref = (x.astype(jnp.float32).reshape(-1, dimension) - min_val) / (max_val - min_val)

    assert y.shape == (x.size // dimension, dimension)
    assert y.dtype == jnp.float32
    assert jnp.allclose(y, ref, atol=1e-6, rtol=1e-5)

    print("KERNEL_OK")
</pallas_src>

<mosaic_0001>
module attributes {stable_mosaic.version = 11 : i64} {
  func.func @_minmax_kernel(%arg0: i32, %arg1: memref<4x512xf32, #tpu.memory_space<vmem>>, %arg2: memref<4x512xf32, #tpu.memory_space<vmem>>) attributes {dimension_semantics = [#tpu.dimension_semantics<parallel>], iteration_bounds = array<i64: 1>, scalar_prefetch = 0 : i64, scratch_operands = 0 : i64, tpu.core_type = #tpu.core_type<tc>, window_params = [{transform_indices = @transform_0, window_bounds = array<i64: 4, 512>}, {transform_indices = @transform_1, window_bounds = array<i64: 4, 512>}]} {
    %c0 = arith.constant 0 : index
    %c0_0 = arith.constant 0 : index
    %0 = vector.load %arg1[%c0, %c0_0] : memref<4x512xf32, #tpu.memory_space<vmem>>, vector<4x512xf32>
    %cst = arith.constant -1.000000e+00 : f32
    %1 = vector.broadcast %cst : f32 to vector<4x512xf32>
    %2 = arith.subf %0, %1 : vector<4x512xf32>
    %cst_1 = arith.constant 6.000000e+00 : f32
    %3 = vector.broadcast %cst_1 : f32 to vector<4x512xf32>
    %4 = arith.divf %2, %3 : vector<4x512xf32>
    %c0_2 = arith.constant 0 : index
    %c0_3 = arith.constant 0 : index
    %5 = vector.load %arg2[%c0_2, %c0_3] : memref<4x512xf32, #tpu.memory_space<vmem>>, vector<4x512xf32>
    tpu.vector_store %arg2[%c0_2, %c0_3], %4 {strides = array<i32>} : memref<4x512xf32, #tpu.memory_space<vmem>>, vector<4x512xf32>,
    return
  }
  func.func @transform_0(%arg0: i32) -> (i32, i32) {
    %c0_i32 = arith.constant 0 : i32
    %c0_i32_0 = arith.constant 0 : i32
    return %arg0, %c0_i32 : i32, i32
  }
  func.func @transform_1(%arg0: i32) -> (i32, i32) {
    %c0_i32 = arith.constant 0 : i32
    %c0_i32_0 = arith.constant 0 : i32
    return %arg0, %c0_i32 : i32, i32
  }
}

</mosaic_0001>

<bundles_post_ra>
// kernel: tpu_custom_call.1
= control target key start
LH: loop header
LB: loop body
LE: loop exit
PB: predicated region body
PF: predicated region fallthrough
CT: control target
= control target key end

     0   :  { %6 = vsyncpa [#allocation3], 0  ;;  %s133_s0 = inlined_call_operand.hbm [shape: f32[4,512], index: 0, kind: input, shape index: {}]   ;;  %s134_s1 = inlined_call_operand.hbm [shape: f32[4,512], index: 1, kind: output, shape index: {}]  }
   0x1   :  { %7 = vsyncpa [#allocation4], 0  ;;  %s13_s8 = sshll.u32 %s133_s0, 4  ;;  %s114_s9 = smov [#allocation2]   ;;  %s14_s8 = int_to_ptr.hbm [resolvable:$true] %s13_s8 }
   0x2   :  { %s15_s10 = sshll.u32 %s114_s9, 4  ;;  %s16_s10 = int_to_ptr.vmem [resolvable:$true] %s15_s10 }
   0x3   :  { %18 = dma.hbm_to_vmem [thread:$0]  %s14_s8, 256, %s16_s10, [#allocation3]  }
   0x4   :  { %110 = dma.done.wait [#allocation3], 256  }
   0x5   :  { %111 = vsyncadd [#allocation3], 4294967040  ;;  %v115_v0 = vmov 6.0   ;;  %v23_v3 = vld [vmem:[#allocation2] sm:$0xff]  ;;  %v24_v5 = vld [vmem:[#allocation2 + $0x8] sm:$0xff]  ;;  %s116_s0 = smov [#allocation5]  }
   0x6   :  { %60 = vrcp.f32 %v115_v0  ;;  %v55_v7 = vadd.f32 1.0, %v23_v3  ;;  %v56_v8 = vadd.f32 1.0, %v24_v5  ;;  %s43_s11 = sshll.u32 %s116_s0, 4  ;;  %s45_s14 = sshll.u32 %s134_s1, 4  ;;  %s44_s11 = int_to_ptr.vmem [resolvable:$true] %s43_s11  ;;  %s46_s14 = int_to_ptr.hbm [resolvable:$true] %s45_s14 }
   0xc   :  { %v61_v1 = vpop.eup %60 }
   0xd   :  { %v28_v2 = vmul.f32 6.0, %v61_v1  ;;  %vm32_vm0 = vweird.f32 %v61_v1 }
   0xf   :  { %v29_v4 = vsub.f32 1.0, %v28_v2 }
  0x11   :  { %v30_v6 = vmul.f32 %v61_v1, %v29_v4 }
  0x13   :  { %v31_v9 = vadd.f32 %v61_v1, %v30_v6 }
  0x15   :  { %v33_v10 = vsel %vm32_vm0, %v61_v1, %v31_v9 }
  0x16   :  { %v34_v11 = vmul.f32 %v55_v7, %v33_v10  ;;  %v35_v12 = vmul.f32 %v56_v8, %v33_v10 }
  0x18   :  { %36 = vst [vmem:[#allocation5] sm:$0xff] %v34_v11 }
  0x19   :  { %37 = vst [vmem:[#allocation5 + $0x8] sm:$0xff] %v35_v12 }
  0x1a   :  { %48 = dma.vmem_to_hbm [thread:$0]  %s44_s11, 256, %s46_s14, [#allocation4]  }
  0x1b   :  { %112 = dma.done.wait [#allocation4], 256  }
  0x1c   :  { %113 = vsyncadd [#allocation4], 4294967040 }
  0x1d   :  { %53 = vsyncpa [#allocation3], 1 }
  0x1e   :  { %54 = vsyncpa [#allocation4], 1 }

</bundles_post_ra>
